<compile_context>
chip_gen: v7x
topology: tpu7x:2x2x1
jax: 0.10.0
libtpu: 0.0.40
codegen_flags: <defaults>
</compile_context>

<pallas_src>
import jax
import jax.numpy as jnp
from jax.experimental import pallas as pl
from jax.experimental.pallas import tpu as pltpu


def _selfattention_kernel(gamma_ref,            # SMEM (1,)
                          x_ref,                # (TB, N, V) VMEM
                          w_ref, b_ref,         # (V, 3V), (1, 3V) VMEM
                          out_ref):             # (TB, N, V) VMEM
    tb, n, v = x_ref.shape
    x = x_ref[...]                               # (TB, N, V) f32
    x2 = x.reshape(tb * n, v)                    # leading-dim merge: free

    # Fused q|k|v projection over all TB*N rows in one MXU dot.  The kqinput
    # feature selection is embedded as zero rows of w_ref, so no lane slicing
    # of x is needed inside the kernel.
    qkv = jnp.dot(x2, w_ref[...], preferred_element_type=jnp.float32) + b_ref[...]
    q = qkv[:, :v].reshape(tb, n, v)             # (TB, N, V)
    k = qkv[:, v:2 * v].reshape(tb, n, v)        # (TB, N, V)
    vv = qkv[:, 2 * v:].reshape(tb, n, v)        # (TB, N, V)

    # attn[b, a, c] = sum_n k[b, n, a] * q[b, n, c]   == bmm(k^T, q) -> (TB, V, V)
    attn = jnp.einsum("bna,bnc->bac", k, q, preferred_element_type=jnp.float32)

    # softmax over last dim (approx reciprocal -> EUP slot)
    attn = attn - jnp.max(attn, axis=-1, keepdims=True)
    e = jnp.exp(attn)
    p = e * pl.reciprocal(jnp.sum(e, axis=-1, keepdims=True), approx=True)

    # out[b, n, c] = sum_a v[b, n, a] * p[b, a, c]    == bmm(v, attn)
    out = jnp.einsum("bnv,bvc->bnc", vv, p, preferred_element_type=jnp.float32)

    out_ref[...] = gamma_ref[0] * out + x


def _choose_tb(B, N, V, max_tb=64, target_bytes=256 * 1024):
    """Batch-tile size: big enough to amortize per-step overhead, capped for
    compile time / intermediate (TB,V,V) footprint, and kept so the grid has
    >= 2 steps when B allows (both v7x TensorCores get work)."""
    per_batch = N * V * 4
    tb = max(1, min(max_tb, target_bytes // per_batch))
    tb = min(tb, B)
    if B > 1 and tb >= B:
        tb = pl.cdiv(B, 2)
    return tb


def selfattention_forward(x, params, kq_size, flag=False):
    """x: (B, N, E) with E == v_size. params: dict of weights (see init_params)."""
    B, N, E = x.shape
    V = params["wv"].shape[0]
    assert E == V, "embedding_size must equal v_size (required by nn.Linear(v_size, v_size))"

    orig_dtype = x.dtype
    x = x.astype(jnp.float32)

    Kq = kq_size
    kq_lo = 0 if flag else V - Kq

    # Embed the kq feature slice into (V, V) weight matrices (zero rows outside the
    # slice), then fuse q|k|v into a single (V, 3V) matrix.  Pure-JAX glue, done once.
    wq_e = jnp.zeros((V, V), jnp.float32).at[kq_lo:kq_lo + Kq, :].set(
        params["wq"].T.astype(jnp.float32))
    wk_e = jnp.zeros((V, V), jnp.float32).at[kq_lo:kq_lo + Kq, :].set(
        params["wk"].T.astype(jnp.float32))
    wv_t = params["wv"].T.astype(jnp.float32)
    w_all = jnp.concatenate([wq_e, wk_e, wv_t], axis=1)                      # (V, 3V)
    b_all = jnp.concatenate(
        [params["bq"], params["bk"], params["bv"]]).reshape(1, 3 * V).astype(jnp.float32)
    gamma = params["gamma"].reshape(1).astype(jnp.float32)                   # (1,)

    tb = _choose_tb(B, N, V)
    grid_b = pl.cdiv(B, tb)
    B_pad = grid_b * tb
    x_in = jnp.pad(x, ((0, B_pad - B), (0, 0), (0, 0))) if B_pad != B else x

    full = lambda shape: pl.BlockSpec(shape, lambda b: (0, 0))

    out = pl.pallas_call(
        _selfattention_kernel,
        out_shape=jax.ShapeDtypeStruct((B_pad, N, V), jnp.float32),
        grid=(grid_b,),
        in_specs=[
            pl.BlockSpec(memory_space=pltpu.MemorySpace.SMEM),   # gamma (1,)
            pl.BlockSpec((tb, N, V), lambda b: (b, 0, 0)),       # x (batched block)
            full((V, 3 * V)),                                    # fused wq|wk|wv
            full((1, 3 * V)),                                    # fused bq|bk|bv
        ],
        out_specs=pl.BlockSpec((tb, N, V), lambda b: (b, 0, 0)),
        compiler_params=pltpu.CompilerParams(
            dimension_semantics=("parallel",)),
    )(gamma, x_in, w_all, b_all)

    return out[:B].astype(orig_dtype)


def init_params(key, kq_size, v_size):
    ks = jax.random.split(key, 6)
    # PyTorch nn.Linear default: U(-1/sqrt(fan_in), 1/sqrt(fan_in))
    lim_kq = 1.0 / jnp.sqrt(kq_size)
    lim_v = 1.0 / jnp.sqrt(v_size)
    params = {
        "wq": jax.random.uniform(ks[0], (v_size, kq_size), jnp.float32, -lim_kq, lim_kq),
        "bq": jax.random.uniform(ks[1], (v_size,), jnp.float32, -lim_kq, lim_kq),
        "wk": jax.random.uniform(ks[2], (v_size, kq_size), jnp.float32, -lim_kq, lim_kq),
        "bk": jax.random.uniform(ks[3], (v_size,), jnp.float32, -lim_kq, lim_kq),
        "wv": jax.random.uniform(ks[4], (v_size, v_size), jnp.float32, -lim_v, lim_v),
        "bv": jax.random.uniform(ks[5], (v_size,), jnp.float32, -lim_v, lim_v),
        # Module __init__ uses zeros(1); use a nonzero value so the attention path
        # is actually exercised (gamma=0 would make output == input).
        "gamma": jnp.array([0.5], jnp.float32),
    }
    return params


def reference_forward(x, params, kq_size, flag=False):
    x = x.astype(jnp.float32)
    E = x.shape[-1]
    kq = x[:, :, E - kq_size:] if not flag else x[:, :, :kq_size]
    q = kq @ params["wq"].T + params["bq"]
    k = kq @ params["wk"].T + params["bk"]
    v = x @ params["wv"].T + params["bv"]
    attn = jnp.einsum("bna,bnc->bac", k, q)
    attn = jax.nn.softmax(attn, axis=-1)
    out = jnp.einsum("bnv,bvc->bnc", v, attn)
    return params["gamma"][0] * out + x


if __name__ == "__main__":
    B, N, V, KQ = 8, 8, 32, 16            # batch, nodes, embedding(=v_size), kq_size
    key = jax.random.PRNGKey(0)
    kx, kp = jax.random.split(key)
    x = jax.random.normal(kx, (B, N, V), jnp.float32)
    params = init_params(kp, KQ, V)

    out = selfattention_forward(x, params, kq_size=KQ, flag=False)
    out = jax.block_until_ready(out)

    ref = reference_forward(x, params, kq_size=KQ, flag=False)
    assert out.shape == (B, N, V)
    # Tolerance accounts for the EUP approximate-reciprocal softmax denominator.
    assert jnp.allclose(out, ref, atol=2e-3, rtol=2e-3), "mismatch vs reference"
    print("KERNEL_OK")
</pallas_src>

<mosaic_0001>
module attributes {stable_mosaic.version = 11 : i64} {
  func.func @_selfattention_kernel(%arg0: i32, %arg1: memref<1xf32, #tpu.memory_space<smem>>, %arg2: memref<4x8x32xf32, #tpu.memory_space<vmem>>, %arg3: memref<32x96xf32, #tpu.memory_space<vmem>>, %arg4: memref<1x96xf32, #tpu.memory_space<vmem>>, %arg5: memref<4x8x32xf32, #tpu.memory_space<vmem>>) attributes {dimension_semantics = [#tpu.dimension_semantics<parallel>], iteration_bounds = array<i64: 2>, scalar_prefetch = 0 : i64, scratch_operands = 0 : i64, tpu.core_type = #tpu.core_type<tc>, window_params = [{transform_indices = @transform_0, window_bounds = array<i64: 1>}, {transform_indices = @transform_1, window_bounds = array<i64: 4, 8, 32>}, {pipeline_mode = #tpu.pipeline_mode<synchronous>, transform_indices = @transform_2, window_bounds = array<i64: 32, 96>}, {pipeline_mode = #tpu.pipeline_mode<synchronous>, transform_indices = @transform_3, window_bounds = array<i64: 1, 96>}, {transform_indices = @transform_4, window_bounds = array<i64: 4, 8, 32>}]} {
    %c0 = arith.constant 0 : index
    %c0_0 = arith.constant 0 : index
    %c0_1 = arith.constant 0 : index
    %0 = vector.load %arg2[%c0, %c0_0, %c0_1] : memref<4x8x32xf32, #tpu.memory_space<vmem>>, vector<4x8x32xf32>
    %1 = vector.shape_cast %0 : vector<4x8x32xf32> to vector<32x32xf32>
    %c0_2 = arith.constant 0 : index
    %c0_3 = arith.constant 0 : index
    %2 = vector.load %arg3[%c0_2, %c0_3] : memref<32x96xf32, #tpu.memory_space<vmem>>, vector<32x96xf32>
    %cst = arith.constant dense<0.000000e+00> : vector<32x96xf32>
    %3 = tpu.matmul %1, %2, %cst {dimension_numbers = #tpu.dot_dimension_numbers<[1], [0], [0], [1], [0, 0, 1, 1], [], []>} : vector<32x32xf32>, vector<32x96xf32>, vector<32x96xf32> -> vector<32x96xf32>
    %c0_4 = arith.constant 0 : index
    %c0_5 = arith.constant 0 : index
    %4 = vector.load %arg4[%c0_4, %c0_5] : memref<1x96xf32, #tpu.memory_space<vmem>>, vector<1x96xf32>
    %5 = vector.broadcast %4 : vector<1x96xf32> to vector<32x96xf32>
    %6 = arith.addf %3, %5 : vector<32x96xf32>
    %7 = vector.extract_strided_slice %6 {offsets = [0, 0], sizes = [32, 32], strides = [1, 1]} : vector<32x96xf32> to vector<32x32xf32>
    %8 = vector.shape_cast %7 : vector<32x32xf32> to vector<4x8x32xf32>
    %9 = vector.extract_strided_slice %6 {offsets = [0, 32], sizes = [32, 32], strides = [1, 1]} : vector<32x96xf32> to vector<32x32xf32>
    %10 = vector.shape_cast %9 : vector<32x32xf32> to vector<4x8x32xf32>
    %11 = vector.extract_strided_slice %6 {offsets = [0, 64], sizes = [32, 32], strides = [1, 1]} : vector<32x96xf32> to vector<32x32xf32>
    %12 = vector.shape_cast %11 : vector<32x32xf32> to vector<4x8x32xf32>
    "tpu.trace_start"() <{level = 10 : i32, message = "bna,bnc->bac"}> : () -> ()
    %cst_6 = arith.constant dense<0.000000e+00> : vector<4x32x32xf32>
    %13 = tpu.matmul %10, %8, %cst_6 {dimension_numbers = #tpu.dot_dimension_numbers<[1], [1], [2], [2], [0, 0, 0, 2, 1, 2], [0], [0]>} : vector<4x8x32xf32>, vector<4x8x32xf32>, vector<4x32x32xf32> -> vector<4x32x32xf32>
    "tpu.trace_stop"() : () -> ()
    %cst_7 = arith.constant dense<0xFF800000> : vector<4x32xf32>
    %14 = vector.multi_reduction <maximumf>, %13, %cst_7 [2] : vector<4x32x32xf32> to vector<4x32xf32>
    %15 = vector.shape_cast %14 : vector<4x32xf32> to vector<4x32x1xf32>
    %16 = vector.broadcast %15 : vector<4x32x1xf32> to vector<4x32x32xf32>
    %17 = arith.subf %13, %16 : vector<4x32x32xf32>
    %18 = math.exp %17 : vector<4x32x32xf32>
    %cst_8 = arith.constant dense<0.000000e+00> : vector<4x32xf32>
    %19 = vector.multi_reduction <add>, %18, %cst_8 [2] : vector<4x32x32xf32> to vector<4x32xf32>
    %20 = vector.shape_cast %19 : vector<4x32xf32> to vector<4x32x1xf32>
    %21 = tpu.reciprocal %20 {approx = true} : vector<4x32x1xf32> -> vector<4x32x1xf32>
    %22 = vector.broadcast %21 : vector<4x32x1xf32> to vector<4x32x32xf32>
    %23 = arith.mulf %18, %22 : vector<4x32x32xf32>
    "tpu.trace_start"() <{level = 10 : i32, message = "bnv,bvc->bnc"}> : () -> ()
    %cst_9 = arith.constant dense<0.000000e+00> : vector<4x8x32xf32>
    %24 = tpu.matmul %12, %23, %cst_9 {dimension_numbers = #tpu.dot_dimension_numbers<[2], [1], [1], [2], [0, 0, 0, 1, 1, 2], [0], [0]>} : vector<4x8x32xf32>, vector<4x32x32xf32>, vector<4x8x32xf32> -> vector<4x8x32xf32>
    "tpu.trace_stop"() : () -> ()
    %c0_10 = arith.constant 0 : index
    %25 = memref.load %arg1[%c0_10] : memref<1xf32, #tpu.memory_space<smem>>
    %26 = vector.broadcast %25 : f32 to vector<4x8x32xf32>
    %27 = arith.mulf %26, %24 : vector<4x8x32xf32>
    %28 = arith.addf %27, %0 : vector<4x8x32xf32>
    %c0_11 = arith.constant 0 : index
    %c0_12 = arith.constant 0 : index
    %c0_13 = arith.constant 0 : index
    %29 = vector.load %arg5[%c0_11, %c0_12, %c0_13] : memref<4x8x32xf32, #tpu.memory_space<vmem>>, vector<4x8x32xf32>
    tpu.vector_store %arg5[%c0_11, %c0_12, %c0_13], %28 {strides = array<i32>} : memref<4x8x32xf32, #tpu.memory_space<vmem>>, vector<4x8x32xf32>,
    return
  }
  func.func @transform_0(%arg0: i32) -> i32 {
    %c0_i32 = arith.constant 0 : i32
    %c0_i32_0 = arith.constant 0 : i32
    return %c0_i32 : i32
  }
  func.func @transform_1(%arg0: i32) -> (i32, i32, i32) {
    %c0_i32 = arith.constant 0 : i32
    %c0_i32_0 = arith.constant 0 : i32
    %c0_i32_1 = arith.constant 0 : i32
    return %arg0, %c0_i32, %c0_i32_0 : i32, i32, i32
  }
  func.func @transform_2(%arg0: i32) -> (i32, i32) {
    %c0_i32 = arith.constant 0 : i32
    %c0_i32_0 = arith.constant 0 : i32
    %c0_i32_1 = arith.constant 0 : i32
    return %c0_i32, %c0_i32_0 : i32, i32
  }
  func.func @transform_3(%arg0: i32) -> (i32, i32) {
    %c0_i32 = arith.constant 0 : i32
    %c0_i32_0 = arith.constant 0 : i32
    %c0_i32_1 = arith.constant 0 : i32
    return %c0_i32, %c0_i32_0 : i32, i32
  }
  func.func @transform_4(%arg0: i32) -> (i32, i32, i32) {
    %c0_i32 = arith.constant 0 : i32
    %c0_i32_0 = arith.constant 0 : i32
    %c0_i32_1 = arith.constant 0 : i32
    return %arg0, %c0_i32, %c0_i32_0 : i32, i32, i32
  }
}

</mosaic_0001>

<bundles_post_ra>
// kernel: tpu_custom_call.1
= control target key start
LH: loop header
LB: loop body
LE: loop exit
PB: predicated region body
PF: predicated region fallthrough
CT: control target
= control target key end

     0   :  { %s2422_s0 = inlined_call_operand.<no memory space> [shape: f32[1], index: 0, kind: input, shape index: {}]   ;;  %s2423_s1 = inlined_call_operand.hbm [shape: f32[8,8,32], index: 1, kind: input, shape index: {}]   ;;  %s2424_s2 = inlined_call_operand.hbm [shape: f32[32,96], index: 2, kind: input, shape index: {}]   ;;  %s2425_s3 = inlined_call_operand.vmem [shape: f32[1,96], index: 3, kind: input, shape index: {}]   ;;  %s2426_s4 = inlined_call_operand.hbm [shape: f32[8,8,32], index: 4, kind: output, shape index: {}]  }
   0x1   :  { %9 = sst [smem:[#allocation2]] %s2422_s0 }
   0x2   :  { %10 = vsyncpa [#allocation4], 0 }
   0x3   :  { %12 = vsyncpa [#allocation4 + $0x1], 0 }
   0x4   :  { %13 = vsyncpa [#allocation7], 0 }
   0x5   :  { %14 = vsyncpa [#allocation5], 0 }
   0x6   :  { %16 = vsyncpa [#allocation5 + $0x1], 0  ;;  %s1976_s17 = smov 0   ;;  %s1978_s18 = smov 0  }
   0x7   :  { %s1980_s19 = smov 0   ;;  %s1982_s20 = smov 0  }
   0x8 LB: > { %s1997_s0 = sadd.s32 4294967295, %s1934_s20   ;;  %s1463_s21 = sadd.s32 4294967294, %s1934_s20   ;;  %s1934_s20 = sphi %s1982_s20, %s2446_s20   ;;  %s1930_s19 = sphi %s1980_s19, %s2445_s19   ;;  %s1926_s18 = sphi %s1978_s18, %s2444_s18   ;;  %s1922_s17 = sphi %s1976_s17, %s2443_s17  }
   0x9   : > { %p63_p0 = scmp.ne.s32.totalorder %s1926_s18, %s1922_s17  ;;  %p2427_p1 = scmp.eq.s32.totalorder %s1997_s0, 0 }
   0xa   : > { %p135_p3 = scmp.eq.s32.totalorder %s1463_s21, 1  ;;  %p1464_p5 = scmp.ge.s32.totalorder %s1934_s20, 1 }
   0xb   : > { %p2006_p4 = por %p2427_p1, %p63_p0  ;;  %p142_p7 = scmp.lt.s32.totalorder %s1934_s20, 3 }
   0xc   : > { %p2011_p6 = por %p135_p3, %p63_p0  ;;  %s1936_s25 = smov [#allocation6]  }
   0xd   : > { %s2430_s22 = scalar_select %p2006_p4, 1, 0 }
   0xe   : > { %s2431_s23 = scalar_select %p2011_p6, 1, 0 }
   0xf   : > { %p2016_p8 = pnand %p1464_p5, %p142_p7  ;;  %s157_s26 = sshll.u32 %s1936_s25, 4  ;;  %s2020_s26 = int_to_ptr.vmem [resolvable:$true] %s157_s26 }
  0x10   : > { %s2032_s28 = sadd.s32 1, %s1934_s20   ;;  %s50_s29 = sadd.s32 1, %s1930_s19 }
  0x11   : > { %s2432_s24 = scalar_select %p2016_p8, 1, 0 }
  0x12   : > { %p1684_p9 = pneg %p2016_p8  ;;  %s47_s30 = ssub.s32 %s1934_s20, %s2032_s28 }
  0x13   : > { %s1806_s7 = scalar_lea.hbm %s2424_s2, 512 }
  0x14   : > { %p2027_p11 = pnand %p1684_p9, %p2427_p1  ;;  %p1807_p12 = scmp.ne.s32.totalorder %s2424_s2, %s1806_s7 }
  0x15   : > { %p1813_p5 = scmp.lt.u32.totalorder %s1806_s7, %s2424_s2 }
  0x16   : > { %p1808_p13 = pneg %p2027_p11 }
  0x18   : > { %p1809_p0 = pnand %p1808_p13, %p1807_p12 }
  0x1a   : > { %p1810_p3 = pneg %p1809_p0 }
  0x1c   : > { %p1815_p7 = pnand %p1813_p5, %p1810_p3 }
  0x1e   : > { %1818 = shalt.err (!%p1815_p7)
}
  0x1f   : > { %s1819_s12 = scalar_lea.vmem %s2020_s26, 512  ;;  %p1827_p2 = scmp.lt.s32.totalorder %s2020_s26, %s2020_s26 }
  0x20   : > { %p1820_p9 = scmp.ne.s32.totalorder %s2020_s26, %s1819_s12  ;;  %p1828_p6 = scmp.lt.s32.totalorder %s1819_s12, %s1819_s12 }
  0x22   : > { %p1822_p10 = pnand %p1820_p9, %p1808_p13  ;;  %p1829_p4 = por %p1828_p6, %p1827_p2 }
  0x24   : > { %p1823_p1 = pneg %p1822_p10 }
  0x26   : > { %p1830_p8 = pnand %p1829_p4, %p1823_p1 }
  0x28   : > { %1833 = shalt.err (!%p1830_p8)
}
  0x29   : > { %s1937_s13 = smov 128   ;;  %s1938_s14 = smov 8  }
  0x2a   : > { %1687 = dma.hbm_to_vmem [thread:$0]  (!%p2027_p11), %s2424_s2, 512, %s2020_s26, [#allocation7], %s1937_s13, %s1937_s13, %s1938_s14  }
  0x2b   : > { %p48_p1 = scmp.eq.s32.totalorder %s47_s30, 0  ;;  %p57_p2 = scmp.ne.s32.totalorder %s1930_s19, %s1926_s18 }
  0x2c   : > { %p58_p4 = scmp.eq.s32.totalorder %s1934_s20, 0  ;;  %p1697_p6 = scmp.lt.s32.totalorder %s1934_s20, 2 }
  0x2d   : > { %s2066_s21 = scalar_select %p48_p1, %s1930_s19, %s50_s29  }
  0x2e   : > { %p59_p8 = por %p58_p4, %p57_p2  ;;  %p2434_p10 = scmp.eq.s32.totalorder %s1997_s0, 1 }
  0x2f   : > { %s174_s27 = sand.u32 1, %s1930_s19   ;;  %s1504_s5 = sshll.u32 %s1934_s20, 9 }
  0x30   : > { %p2070_p12 = por %p2434_p10, %p57_p2  ;;  %s1467_s6 = sshll.u32 %s174_s27, 5 }
  0x31   : > { %s2079_s9 = scalar_lea.hbm %s2423_s1, %s1504_s5  ;;  %s178_s26 = scalar_lea.vmem [#allocation3], %s1467_s6 }
  0x32   : > { %s185_s29 = sshll.u32 %s178_s26, 4  ;;  %p2081_p11 = pnand %p1697_p6, %p59_p8  ;;  %s2085_s29 = int_to_ptr.vmem [resolvable:$true] %s185_s29 }
  0x33   : > { %s2087_s10 = scalar_lea.sflag [#allocation4], %s174_s27  ;;  %s1834_s11 = scalar_lea.hbm %s2079_s9, 512 }
  0x34   : > { %p1835_p13 = scmp.ne.s32.totalorder %s2079_s9, %s1834_s11  ;;  %p1836_p0 = pneg %p2081_p11 }
  0x35   : > { %s1839_s16 = scalar_lea.hbm %s2423_s1, 1024  ;;  %p1840_p7 = scmp.lt.u32.totalorder %s2079_s9, %s2423_s1 }
  0x36   : > { %p1837_p3 = pnand %p1836_p0, %p1835_p13  ;;  %p1841_p9 = scmp.lt.u32.totalorder %s1839_s16, %s1834_s11 }
  0x37   : > { %p1843_p2 = scmp.lt.u32.totalorder %s1834_s11, %s2079_s9 }
  0x38   : > { %p1838_p5 = pneg %p1837_p3  ;;  %p1842_p1 = por %p1841_p9, %p1840_p7 }
  0x3a   : > { %p1844_p4 = por %p1843_p2, %p1842_p1 }
  0x3c   : > { %p1845_p6 = pnand %p1844_p4, %p1838_p5 }
  0x3e   : > { %1848 = shalt.err (!%p1845_p6)
}
  0x3f   : > { %s1849_s27 = scalar_lea.vmem %s2085_s29, 512  ;;  %s1939_s7 = smov [#allocation3]  }
  0x40   : > { %p1850_p8 = scmp.ne.s32.totalorder %s2085_s29, %s1849_s27  ;;  %s1854_s8 = sshll.u32 %s1939_s7, 4  ;;  %s1855_s8 = int_to_ptr.vmem [resolvable:$false] %s1854_s8 }
  0x41   : > { %s1856_s26 = scalar_lea.vmem %s1855_s8, 1024  ;;  %p1857_p3 = scmp.lt.s32.totalorder %s2085_s29, %s1855_s8 }
  0x42   : > { %p1852_p10 = pnand %p1850_p8, %p1836_p0  ;;  %p1858_p7 = scmp.lt.s32.totalorder %s1856_s26, %s1849_s27 }
  0x44   : > { %p1853_p13 = pneg %p1852_p10  ;;  %p1859_p9 = por %p1858_p7, %p1857_p3 }
  0x46   : > { %p1860_p1 = pnand %p1859_p9, %p1853_p13 }
  0x48   : > { %1863 = shalt.err (!%p1860_p1)
}
  0x49   : > { %1691 = dma.hbm_to_vmem [thread:$0]  (!%p2081_p11), %s2079_s9, 512, %s2085_s29, %s2087_s10, %s1937_s13, %s1937_s13, %s1938_s14  }
  0x4a   : > { %p2437_p0 = scmp.ne.s32.totalorder %s2432_s24, 0 }
  0x4b   : > { %s2121_s11 = sand.u32 (!%p2437_p0), 1, %s1926_s18   ;;  %p2438_p5 = scmp.ne.s32.totalorder (!%p2437_p0), %s2430_s22, 0 }
  0x4c   : > { %197 = sbr.rel (%p2437_p0) target bundleno = 1420 (0x58c), region = 36  ;;  %s1471_s12 = sshll.u32 (!%p2437_p0), %s2121_s11, 5 }
  0x4d   : > { %s200_s15 = scalar_lea.sflag (!%p2437_p0), [#allocation4], %s2121_s11  ;;  %s203_s30 = scalar_lea.vmem (!%p2437_p0), [#allocation3], %s1471_s12 }
  0x53   : > { %1909 = dma.done.wait (%p2438_p5), %s200_s15, 512  }
  0x54   : > { %1911 = vsyncadd (%p2438_p5), %s200_s15, 4294966784  ;;  %p2439_p11 = scmp.eq.s32.totalorder %s1997_s0, 0 }
  0x56   : > { %1913 = dma.done.wait (%p2439_p11), [#allocation7], 512   ;;  %p2440_p2 = pmov %p2439_p11 }
  0x57   : > { %vm249_vm0 = vcmask 261120   ;;  %v238_v0 = vld [vmem:[#allocation6] sm:$0xff]  ;;  %v239_v1 = vld [vmem:[#allocation6 + $0x8] sm:$0xff]  ;;  %v240_v2 = vld [vmem:[#allocation6 + $0x10] sm:$0xff]  ;;  %s1940_s13 = smov 96   ;;  %vm383_vm1 = vcmask 64512  }
  0x58   : > { %1915 = vsyncadd (%p2440_p2), [#allocation7], 4294966784  ;;  %v1644_v3 = vpack.c.bf16 %v239_v1, %v238_v0  ;;  %v241_v4 = vld [vmem:[#allocation6 + $0x18] sm:$0xff]  ;;  %v2135_v5 = vld [vmem:[%s203_s30] sm:$0xff]  ;;  %s1941_s14 = smov 64   ;;  %vm1943_vm2 = vmmov 0  }
  0x59   : > { %v1648_v6 = vpack.c.bf16 %v241_v4, %v240_v2  ;;  %1562 = vmatprep.mubr.msk.f32.mxu0 %vm249_vm0, %v2135_v5  ;;  %v2139_v7 = vld [vmem:[%s203_s30 + $0x8] sm:$0xff]  ;;  %v2141_v8 = vld [vmem:[%s203_s30 + $0x10] sm:$0xff]  ;;  %v2147_v9 = vld [vmem:[%s203_s30 + $0x18] sm:$0xff]  ;;  %s1352_s9 = sld [smem:[#allocation2]]  ;;  %s231_s29 = scalar_lea.vmem [#allocation8], %s1471_s12 }
  0x5a   : > { %1645 = vmatprep.subr.bf16.mxu0 %v1644_v3  ;;  %v1474_v10 = vld [vmem:[%s2425_s3] ss:$0 sm:$0xff]  ;;  %s1380_s10 = sshll.u32 %s231_s29, 4  ;;  %s1505_s16 = sshll.u32 %s1997_s0, 9  ;;  %s2371_s10 = int_to_ptr.vmem [resolvable:$true] %s1380_s10 }
  0x5b   : > { %1647 = vmatpush3.bf16.msra.mxu0 %v1644_v3  ;;  %s2376_s27 = scalar_lea.hbm %s2426_s4, %s1505_s16  ;;  %s1367_s7 = scalar_lea.sflag [#allocation5], %s2121_s11 }
  0x5c   : > { %1649 = vmatprep.subr.bf16.mxu0 %v1648_v6  ;;  %s1864_s8 = scalar_lea.vmem %s2371_s10, 512  ;;  %s1945_s0 = smov [#allocation8]  }
  0x5d   : > { %p1865_p4 = scmp.ne.s32.totalorder %s2371_s10, %s1864_s8  ;;  %s1868_s26 = sshll.u32 %s1945_s0, 4  ;;  %s1869_s26 = int_to_ptr.vmem [resolvable:$false] %s1868_s26 }
  0x5e   : > { %s1870_s12 = scalar_lea.vmem %s1869_s26, 1024  ;;  %p1871_p10 = scmp.lt.s32.totalorder %s2371_s10, %s1869_s26 }
  0x5f   : > { %1651 = vmatpush3.bf16.msra.mxu0 %v1648_v6  ;;  %p1866_p6 = pnand %p1865_p4, %p2070_p12  ;;  %p1872_p13 = scmp.lt.s32.totalorder %s1870_s12, %s1864_s8 }
  0x61   : > { %p1867_p8 = pneg %p1866_p6  ;;  %p1873_p3 = por %p1872_p13, %p1871_p10 }
  0x62   : > { %1563 = vmatmul.mubr.msk.f32.vlgmr.msra.gmra.mrb[0].mxu0 %vm249_vm0, %v2139_v7 }
  0x63   : > { %1565 = vmatprep.mubr.msk.f32.mxu0 %vm249_vm0, %v2141_v8  ;;  %p1874_p7 = pnand %p1873_p3, %p1867_p8 }
  0x66   : > { %1566 = vmatmul.mubr.msk.f32.gmra.mrb[2].mxu0 %vm249_vm0, %v2147_v9 }
 0x135   : > { %v1564_v11 = vpop.f32.mrb[0].mxu0 }
 0x136   : > { %v328_v12 = vpop.f32.mrb[1].mxu0  ;;  %v2156_v14 = vadd.f32 %v1564_v11, %v1474_v10 }
 0x137   : > { %v2154_v13 = vadd.f32 %v1474_v10, %v328_v12 }
 0x139   : > { %348 = vrot.lane.b32.xlu0 %v2154_v13, %s1940_s13  ;;  %1568 = vmatprep.subr.mxu1 %v2154_v13  ;;  %v1567_v15 = vpop.f32.mrb[2].mxu0 }
 0x13a   : > { %1569 = vmatpush3.msra.mxu1 %v2154_v13  ;;  %v338_v16 = vpop.f32.mrb[3].mxu0  ;;  %v2165_v18 = vadd.f32 %v1567_v15, %v1474_v10 }
 0x13b   : > { %1576 = vmatprep.subr.mxu1 %v2156_v14  ;;  %v2162_v17 = vadd.f32 %v1474_v10, %v338_v16 }
 0x13d   : > { %482 = vrot.lane.b32.xlu0 %v2156_v14, %s1940_s13  ;;  %615 = vrot.lane.b32.xlu1 %v2162_v17, %s1940_s13 }
 0x13e   : > { %1584 = vmatprep.subr.mxu0 %v2162_v17 }
 0x13f   : > { %1585 = vmatpush3.msra.mxu0 %v2162_v17 }
 0x141   : > { %748 = vrot.lane.b32.xlu1 %v2165_v18, %s1940_s13 }
 0x1ab   : > { %v349_v19 = vpop.permute.xlu0 %348 }
 0x1ac   : > { %351 = vxpose.xlu0.b32.start.end [1/1] (short) (narrow) %v349_v19, 32 }
 0x1af   : > { %v483_v20 = vpop.permute.xlu0 %482  ;;  %v616_v21 = vpop.permute.xlu1 %615 }
 0x1b0   : > { %485 = vxpose.xlu1.b32.start.end [1/1] (short) (narrow) %v483_v20, 32 }
 0x1b3   : > { %v749_v22 = vpop.permute.xlu1 %748 }
 0x1b9   : > { %618 = vxpose.xlu0.b32.start.end [1/1] (short) (narrow) %v616_v21, 32 }
 0x1bd   : > { %751 = vxpose.xlu1.b32.start.end [1/1] (short) (narrow) %v749_v22, 32 }
 0x22c   : > { %v367_v23 = vpop.trf.xlu0 }
 0x22d   : > { %1570 = vmatprep.mubr.msk.f32.mxu1 %vm383_vm1, %v367_v23 }
 0x230   : > { %v368_v24 = vpop.trf.xlu0  ;;  %v501_v25 = vpop.trf.xlu1 }
 0x231   : > { %1571 = vmatmul.mubr.msk.f32.vlgmr.msra.gmra.mrb[0].mxu1 %vm383_vm1, %v368_v24 }
 0x232   : > { %1577 = vmatpush3.msra.mxu1 %v2156_v14 }
 0x233   : > { %1592 = vmatprep.subr.mxu1 %v2165_v18 }
 0x234   : > { %v369_v26 = vpop.trf.xlu0  ;;  %v502_v27 = vpop.trf.xlu1 }
 0x235   : > { %1573 = vmatprep.mubr.msk.f32.mxu1 %vm383_vm1, %v369_v26 }
 0x238   : > { %v370_v28 = vpop.trf.xlu0  ;;  %v503_v29 = vpop.trf.xlu1 }
 0x239   : > { %1574 = vmatmul.mubr.msk.f32.gmra.mrb[2].mxu1 %vm383_vm1, %v370_v28 }
 0x23a   : > { %1578 = vmatprep.mubr.msk.f32.mxu1 %vm383_vm1, %v501_v25 }
 0x23c   : > { %v634_v30 = vpop.trf.xlu0  ;;  %v504_v31 = vpop.trf.xlu1 }
 0x23d   : > { %1579 = vmatmul.mubr.msk.f32.vlgmr.msra.gmra.mrb[4].mxu1 %vm383_vm1, %v502_v27  ;;  %1586 = vmatprep.mubr.msk.f32.mxu0 %vm383_vm1, %v634_v30 }
 0x23e   : > { %1593 = vmatpush3.msra.mxu1 %v2165_v18  ;;  %1581 = vmatprep.mubr.msk.f32.mxu1 %vm383_vm1, %v503_v29 }
 0x240   : > { %v635_v32 = vpop.trf.xlu0  ;;  %v767_v33 = vpop.trf.xlu1 }
 0x241   : > { %1587 = vmatmul.mubr.msk.f32.vlgmr.msra.gmra.mrb[4].mxu0 %vm383_vm1, %v635_v32  ;;  %1582 = vmatmul.mubr.msk.f32.gmra.mrb[6].mxu1 %vm383_vm1, %v504_v31 }
 0x242   : > { %1594 = vmatprep.mubr.msk.f32.mxu1 %vm383_vm1, %v767_v33 }
 0x244   : > { %v636_v34 = vpop.trf.xlu0  ;;  %v768_v35 = vpop.trf.xlu1 }
 0x245   : > { %1589 = vmatprep.mubr.msk.f32.mxu0 %vm383_vm1, %v636_v34  ;;  %1595 = vmatmul.mubr.msk.f32.vlgmr.msra.gmra.mrb[8].mxu1 %vm383_vm1, %v768_v35 }
 0x248   : > { %v637_v36 = vpop.trf.xlu0  ;;  %v769_v37 = vpop.trf.xlu1 }
 0x249   : > { %1590 = vmatmul.mubr.msk.f32.gmra.mrb[6].mxu0 %vm383_vm1, %v637_v36  ;;  %1597 = vmatprep.mubr.msk.f32.mxu1 %vm383_vm1, %v769_v37 }
 0x24c   : > { %v770_v38 = vpop.trf.xlu1 }
 0x24d   : > { %1598 = vmatmul.mubr.msk.f32.gmra.mrb[10].mxu1 %vm383_vm1, %v770_v38 }
 0x304   : > { %v1572_v39 = vpop.f32.mrb[0].mxu1 }
 0x305   : > { %v462_v40 = vpop.f32.mrb[1].mxu1  ;;  %v883_v41 = vsel %vm249_vm0, %v1572_v39, -inf }
 0x306   : > { %884 = vmax.xlane.f32.xlu1 %v883_v41  ;;  %v880_v42 = vsel %vm249_vm0, %v462_v40, -inf }
 0x307   : > { %881 = vmax.xlane.f32.xlu0 %v880_v42 }
 0x30c   : > { %v2192_v43 = vpop.f32.mrb[2].mxu1 }
 0x30d   : > { %v2194_v44 = vpop.f32.mrb[3].mxu1  ;;  %v889_v54 = vsel %vm249_vm0, %v2192_v43, -inf }
 0x30e   : > { %v886_v56 = vsel %vm249_vm0, %v2194_v44, -inf }
 0x310   : > { %v2196_v45 = vpop.f32.mrb[4].mxu1 }
 0x311   : > { %v2198_v46 = vpop.f32.mrb[5].mxu1  ;;  %v895_v57 = vsel %vm249_vm0, %v2196_v45, -inf }
 0x312   : > { %v892_v2 = vsel %vm249_vm0, %v2198_v46, -inf }
 0x314   : > { %v1588_v47 = vpop.f32.mrb[4].mxu0  ;;  %v2200_v48 = vpop.f32.mrb[6].mxu1 }
 0x315   : > { %v728_v49 = vpop.f32.mrb[5].mxu0  ;;  %v907_v50 = vsel %vm249_vm0, %v1588_v47, -inf  ;;  %v2203_v51 = vpop.f32.mrb[7].mxu1  ;;  %v901_v3 = vsel %vm249_vm0, %v2200_v48, -inf }
 0x316   : > { %908 = vmax.xlane.f32.xlu0 %v907_v50  ;;  %v904_v52 = vsel %vm249_vm0, %v728_v49, -inf  ;;  %v898_v62 = vsel %vm249_vm0, %v2203_v51, -inf }
 0x317   : > { %905 = vmax.xlane.f32.xlu1 %v904_v52 }
 0x318   : > { %v2206_v53 = vpop.f32.mrb[8].mxu1 }
 0x319   : > { %v2210_v55 = vpop.f32.mrb[9].mxu1  ;;  %v919_v6 = vsel %vm249_vm0, %v2206_v53, -inf }
 0x31a   : > { %890 = vmax.xlane.f32.xlu0 %v889_v54  ;;  %v916_v1 = vsel %vm249_vm0, %v2210_v55, -inf }
 0x31b   : > { %887 = vmax.xlane.f32.xlu1 %v886_v56  ;;  %v1942_v56 = vmov 0.0|0.0  }
 0x31c   : > { %v2216_v58 = vpop.f32.mrb[6].mxu0  ;;  %1652 = vmatprep.subr.bf16.mxu0 %v1942_v56  ;;  %1658 = vmatprep.subr.bf16.mxu1 %v1942_v56 }
 0x31d   : > { %v2218_v59 = vpop.f32.mrb[7].mxu0  ;;  %v913_v61 = vsel %vm249_vm0, %v2216_v58, -inf }
 0x31e   : > { %896 = vmax.xlane.f32.xlu0 %v895_v57  ;;  %v910_v60 = vsel %vm249_vm0, %v2218_v59, -inf }
 0x31f   : > { %911 = vmax.xlane.f32.xlu1 %v910_v60 }
 0x320   : > { %v2226_v63 = vpop.f32.mrb[10].mxu1 }
 0x321   : > { %v2228_v0 = vpop.f32.mrb[11].mxu1  ;;  %v925_v10 = vsel %vm249_vm0, %v2226_v63, -inf }
 0x322   : > { %914 = vmax.xlane.f32.xlu0 %v913_v61  ;;  %v922_v4 = vsel %vm249_vm0, %v2228_v0, -inf }
 0x323   : > { %899 = vmax.xlane.f32.xlu1 %v898_v62 }
 0x326   : > { %893 = vmax.xlane.f32.xlu0 %v892_v2 }
 0x327   : > { %917 = vmax.xlane.f32.xlu1 %v916_v1 }
 0x32a   : > { %902 = vmax.xlane.f32.xlu0 %v901_v3 }
 0x32b   : > { %923 = vmax.xlane.f32.xlu1 %v922_v4 }
 0x32e   : > { %920 = vmax.xlane.f32.xlu0 %v919_v6 }
 0x332   : > { %926 = vmax.xlane.f32.xlu0 %v925_v10 }
 0x33c   : > { %1056 = vrot.lane.b32.xlu1 %v2154_v13, %s1941_s14 }
 0x393   : > { %v885_v11 = vpop.xlane.xlu1 %884 }
 0x394   : > { %v929_v12 = vsub.f32 %v1572_v39, %v885_v11  ;;  %v882_v15 = vpop.xlane.xlu0 %881 }
 0x395   : > { %v928_v16 = vsub.f32 %v462_v40, %v882_v15 }
 0x396   : > { %v946_v19 = vmul.f32 1.442695, %v929_v12 }
 0x397   : > { %v944_v20 = vmul.f32 1.442695, %v928_v16 }
 0x398   : > { %1742 = vpow2.f32 %v946_v19 }
 0x399   : > { %1744 = vpow2.f32 %v944_v20 }
 0x3a2   : > { %v2244_v21 = vpop.eup %1742 }
 0x3a3   : > { %v2246_v22 = vpop.eup %1744  ;;  %v909_v23 = vpop.xlane.xlu0 %908  ;;  %v979_v24 = vsel %vm249_vm0, %v2244_v21, 0.0 }
 0x3a4   : > { %v937_v25 = vsub.f32 %v1588_v47, %v909_v23  ;;  %v906_v26 = vpop.xlane.xlu1 %905  ;;  %980 = vadd.xlane.f32.xlu0 %v979_v24  ;;  %v976_v13 = vsel %vm249_vm0, %v2246_v22, 0.0 }
 0x3a5   : > { %v936_v27 = vsub.f32 %v728_v49, %v906_v26  ;;  %977 = vadd.xlane.f32.xlu1 %v976_v13 }
 0x3a6   : > { %v962_v28 = vmul.f32 1.442695, %v937_v25 }
 0x3a7   : > { %v960_v29 = vmul.f32 1.442695, %v936_v27  ;;  %v891_v30 = vpop.xlane.xlu0 %890 }
 0x3a8   : > { %1746 = vpow2.f32 %v962_v28  ;;  %v931_v31 = vsub.f32 %v2192_v43, %v891_v30  ;;  %v888_v32 = vpop.xlane.xlu1 %887 }
 0x3a9   : > { %1748 = vpow2.f32 %v960_v29  ;;  %v930_v33 = vsub.f32 %v2194_v44, %v888_v32 }
 0x3aa   : > { %v950_v34 = vmul.f32 1.442695, %v931_v31 }
 0x3ab   : > { %v948_v35 = vmul.f32 1.442695, %v930_v33  ;;  %v897_v36 = vpop.xlane.xlu0 %896 }
 0x3ac   : > { %1750 = vpow2.f32 %v950_v34  ;;  %v933_v37 = vsub.f32 %v2196_v45, %v897_v36  ;;  %v912_v38 = vpop.xlane.xlu1 %911  ;;  %v1944_v36 = vmov 0.0  }
 0x3ad   : > { %1752 = vpow2.f32 %v948_v35  ;;  %v938_v43 = vsub.f32 %v2218_v59, %v912_v38  ;;  %1608 = vmatprep.mubr.msk.f32.mxu0 %vm1943_vm2, %v1944_v36  ;;  %1619 = vmatprep.mubr.msk.f32.mxu1 %vm1943_vm2, %v1944_v36 }
 0x3ae   : > { %v954_v39 = vmul.f32 1.442695, %v933_v37 }
 0x3af   : > { %v915_v40 = vpop.xlane.xlu0 %914 }
 0x3b0   : > { %1754 = vpow2.f32 %v954_v39  ;;  %v939_v41 = vsub.f32 %v2216_v58, %v915_v40  ;;  %v900_v42 = vpop.xlane.xlu1 %899  ;;  %v964_v58 = vmul.f32 1.442695, %v938_v43 }
 0x3b1   : > { %v934_v59 = vsub.f32 %v2203_v51, %v900_v42 }
 0x3b2   : > { %v2256_v47 = vpop.eup %1746  ;;  %v966_v49 = vmul.f32 1.442695, %v939_v41 }
 0x3b3   : > { %v2259_v44 = vpop.eup %1748  ;;  %v894_v50 = vpop.xlane.xlu0 %893  ;;  %v1003_v52 = vsel %vm249_vm0, %v2256_v47, 0.0  ;;  %v956_v51 = vmul.f32 1.442695, %v934_v59 }
 0x3b4   : > { %1756 = vpow2.f32 %v966_v49  ;;  %v932_v45 = vsub.f32 %v2198_v46, %v894_v50  ;;  %1004 = vadd.xlane.f32.xlu0 %v1003_v52  ;;  %v1000_v54 = vsel %vm249_vm0, %v2259_v44, 0.0  ;;  %v918_v62 = vpop.xlane.xlu1 %917 }
 0x3b5   : > { %1001 = vadd.xlane.f32.xlu1 %v1000_v54  ;;  %v940_v6 = vsub.f32 %v2210_v55, %v918_v62 }
 0x3b6   : > { %v2268_v57 = vpop.eup %1750  ;;  %v952_v60 = vmul.f32 1.442695, %v932_v45 }
 0x3b7   : > { %v2271_v61 = vpop.eup %1752  ;;  %v903_v46 = vpop.xlane.xlu0 %902  ;;  %v985_v1 = vsel %vm249_vm0, %v2268_v57, 0.0  ;;  %v968_v16 = vmul.f32 1.442695, %v940_v6 }
 0x3b8   : > { %1758 = vpow2.f32 %v952_v60  ;;  %v935_v2 = vsub.f32 %v2200_v48, %v903_v46  ;;  %986 = vadd.xlane.f32.xlu0 %v985_v1  ;;  %v982_v3 = vsel %vm249_vm0, %v2271_v61, 0.0  ;;  %v924_v37 = vpop.xlane.xlu1 %923 }
 0x3b9   : > { %983 = vadd.xlane.f32.xlu1 %v982_v3  ;;  %1760 = vpow2.f32 %v964_v58  ;;  %v942_v38 = vsub.f32 %v2228_v0, %v924_v37 }
 0x3ba   : > { %v2278_v4 = vpop.eup %1754  ;;  %v958_v10 = vmul.f32 1.442695, %v935_v2 }
 0x3bb   : > { %v921_v11 = vpop.xlane.xlu0 %920  ;;  %v991_v12 = vsel %vm249_vm0, %v2278_v4, 0.0  ;;  %v972_v39 = vmul.f32 1.442695, %v942_v38 }
 0x3bc   : > { %1762 = vpow2.f32 %v958_v10  ;;  %v941_v15 = vsub.f32 %v2206_v53, %v921_v11  ;;  %992 = vadd.xlane.f32.xlu0 %v991_v12  ;;  %v1057_v42 = vpop.permute.xlu1 %1056 }
 0x3bd   : > { %1764 = vpow2.f32 %v956_v51 }
 0x3be   : > { %v2284_v48 = vpop.eup %1756  ;;  %v970_v19 = vmul.f32 1.442695, %v941_v15 }
 0x3bf   : > { %v927_v20 = vpop.xlane.xlu0 %926  ;;  %v1009_v23 = vsel %vm249_vm0, %v2284_v48, 0.0 }
 0x3c0   : > { %1766 = vpow2.f32 %v970_v19  ;;  %v943_v55 = vsub.f32 %v2226_v63, %v927_v20  ;;  %1010 = vadd.xlane.f32.xlu0 %v1009_v23 }
 0x3c1   : > { %1768 = vpow2.f32 %v968_v16 }
 0x3c2   : > { %v2289_v24 = vpop.eup %1758  ;;  %v974_v25 = vmul.f32 1.442695, %v943_v55 }
 0x3c3   : > { %v988_v53 = vsel %vm249_vm0, %v2289_v24, 0.0  ;;  %v2293_v26 = vpop.eup %1760 }
 0x3c4   : > { %1770 = vpow2.f32 %v974_v25  ;;  %989 = vadd.xlane.f32.xlu1 %v988_v53  ;;  %v1006_v63 = vsel %vm249_vm0, %v2293_v26, 0.0 }
 0x3c5   : > { %1772 = vpow2.f32 %v972_v39 }
 0x3c6   : > { %v2295_v13 = vpop.eup %1762 }
 0x3c7   : > { %v997_v27 = vsel %vm249_vm0, %v2295_v13, 0.0  ;;  %v2301_v28 = vpop.eup %1764 }
 0x3c8   : > { %998 = vadd.xlane.f32.xlu0 %v997_v27  ;;  %1007 = vadd.xlane.f32.xlu1 %v1006_v63  ;;  %v994_v31 = vsel %vm249_vm0, %v2301_v28, 0.0 }
 0x3ca   : > { %v2303_v29 = vpop.eup %1766 }
 0x3cb   : > { %v1015_v30 = vsel %vm249_vm0, %v2303_v29, 0.0  ;;  %v2309_v32 = vpop.eup %1768 }
 0x3cc   : > { %1016 = vadd.xlane.f32.xlu0 %v1015_v30  ;;  %995 = vadd.xlane.f32.xlu1 %v994_v31  ;;  %v1012_v35 = vsel %vm249_vm0, %v2309_v32, 0.0 }
 0x3ce   : > { %v2311_v33 = vpop.eup %1770 }
 0x3cf   : > { %v1021_v34 = vsel %vm249_vm0, %v2311_v33, 0.0  ;;  %v2326_v40 = vpop.eup %1772 }
 0x3d0   : > { %1022 = vadd.xlane.f32.xlu0 %v1021_v34  ;;  %1013 = vadd.xlane.f32.xlu1 %v1012_v35  ;;  %v1018_v41 = vsel %vm249_vm0, %v2326_v40, 0.0 }
 0x3e1   : > { %1204 = vrot.lane.b32.xlu1 %v2162_v17, %s1941_s14 }
 0x3e6   : > { %1130 = vrot.lane.b32.xlu0 %v2156_v14, %s1941_s14 }
 0x405   : > { %1019 = vadd.xlane.f32.xlu1 %v1018_v41 }
 0x416   : > { %1278 = vrot.lane.b32.xlu1 %v2165_v18, %s1941_s14 }
 0x431   : > { %v981_v43 = vpop.xlane.xlu0 %980 }
 0x432   : > { %1774 = vrcp.f32 %v981_v43  ;;  %v978_v17 = vpop.xlane.xlu1 %977 }
 0x433   : > { %1776 = vrcp.f32 %v978_v17 }
 0x43c   : > { %v1775_v14 = vpop.eup %1774 }
 0x43d   : > { %v1777_v49 = vpop.eup %1776  ;;  %v1041_v0 = vmul.f32 %v1775_v14, %v2244_v21 }
 0x43e   : > { %v1040_v50 = vmul.f32 %v1777_v49, %v2246_v22  ;;  %v1353_v49 = vstv %s1352_s9 }
 0x440   : > { %v1653_v52 = vpack.c.bf16 %v1041_v0, %v1040_v50 }
 0x441   : > { %v1005_v45 = vpop.xlane.xlu0 %1004 }
 0x442   : > { %1654 = vmatpush3.bf16.msra.mxu0 %v1653_v52  ;;  %v1002_v54 = vpop.xlane.xlu1 %1001  ;;  %1778 = vrcp.f32 %v1005_v45 }
 0x443   : > { %1655 = vmatprep.subr.bf16.mxu0 %v1942_v56  ;;  %1780 = vrcp.f32 %v1002_v54 }
 0x445   : > { %v987_v18 = vpop.xlane.xlu0 %986 }
 0x446   : > { %1782 = vrcp.f32 %v987_v18  ;;  %v984_v58 = vpop.xlane.xlu1 %983 }
 0x447   : > { %1784 = vrcp.f32 %v984_v58 }
 0x449   : > { %v993_v59 = vpop.xlane.xlu0 %992 }
 0x44a   : > { %1786 = vrcp.f32 %v993_v59 }
 0x44c   : > { %v1779_v60 = vpop.eup %1778 }
 0x44d   : > { %v1781_v62 = vpop.eup %1780  ;;  %v1011_v1 = vpop.xlane.xlu0 %1010  ;;  %v1049_v10 = vmul.f32 %v1779_v60, %v2256_v47 }
 0x44e   : > { %v1048_v6 = vmul.f32 %v1781_v62, %v2259_v44 }
 0x450   : > { %v1783_v46 = vpop.eup %1782  ;;  %v1665_v15 = vpack.c.bf16 %v1049_v10, %v1048_v6 }
 0x451   : > { %v1785_v21 = vpop.eup %1784  ;;  %v990_v22 = vpop.xlane.xlu1 %989  ;;  %v1043_v2 = vmul.f32 %v1783_v46, %v2268_v57 }
 0x452   : > { %1788 = vrcp.f32 %v990_v22  ;;  %v1042_v3 = vmul.f32 %v1785_v21, %v2271_v61 }
 0x453   : > { %1790 = vrcp.f32 %v1011_v1 }
 0x454   : > { %v1656_v51 = vpack.c.bf16 %v1043_v2, %v1042_v3  ;;  %v1787_v16 = vpop.eup %1786 }
 0x455   : > { %v999_v11 = vpop.xlane.xlu0 %998  ;;  %v1008_v12 = vpop.xlane.xlu1 %1007  ;;  %v1045_v20 = vmul.f32 %v1787_v16, %v2278_v4 }
 0x456   : > { %1657 = vmatpush3.bf16.msra.mxu0 %v1656_v51  ;;  %1792 = vrcp.f32 %v1008_v12 }
 0x457   : > { %1664 = vmatprep.subr.bf16.mxu0 %v1942_v56  ;;  %1794 = vrcp.f32 %v999_v11 }
 0x459   : > { %1609 = vmatmul.mubr.msk.f32.vlgmr.msra.gmra.mrb[8].mxu0 %vm249_vm0, %v1057_v42  ;;  %v996_v57 = vpop.xlane.xlu1 %995  ;;  %v1017_v19 = vpop.xlane.xlu0 %1016 }
 0x45a   : > { %1666 = vmatpush3.bf16.msra.mxu0 %v1665_v15  ;;  %1630 = vmatprep.mubr.msk.f32.mxu0 %vm1943_vm2, %v1944_v36  ;;  %1796 = vrcp.f32 %v996_v57 }
 0x45b   : > { %1667 = vmatprep.subr.bf16.mxu0 %v1942_v56  ;;  %1798 = vrcp.f32 %v1017_v19 }
 0x45c   : > { %v1789_v47 = vpop.eup %1788 }
 0x45d   : > { %v1014_v44 = vpop.xlane.xlu1 %1013  ;;  %v1044_v61 = vmul.f32 %v1789_v47, %v2289_v24  ;;  %v1791_v23 = vpop.eup %1790 }
 0x45e   : > { %1800 = vrcp.f32 %v1014_v44  ;;  %v1051_v27 = vmul.f32 %v1791_v23, %v2284_v48  ;;  %v1023_v34 = vpop.xlane.xlu0 %1022 }
 0x45f   : > { %v1659_v55 = vpack.c.bf16 %v1045_v20, %v1044_v61  ;;  %1802 = vrcp.f32 %v1023_v34 }
 0x460   : > { %v1793_v25 = vpop.eup %1792 }
 0x461   : > { %1660 = vmatpush3.bf16.msra.mxu1 %v1659_v55  ;;  %v1050_v53 = vmul.f32 %v1793_v25, %v2293_v26  ;;  %v1795_v63 = vpop.eup %1794  ;;  %v1205_v37 = vpop.permute.xlu1 %1204 }
 0x462   : > { %1661 = vmatprep.subr.bf16.mxu1 %v1942_v56  ;;  %v1047_v4 = vmul.f32 %v1795_v63, %v2295_v13  ;;  %v1131_v41 = vpop.permute.xlu0 %1130 }
 0x463   : > { %v1668_v30 = vpack.c.bf16 %v1051_v27, %v1050_v53 }
 0x464   : > { %v1797_v31 = vpop.eup %1796 }
 0x465   : > { %1669 = vmatpush3.bf16.msra.mxu0 %v1668_v30  ;;  %v1046_v24 = vmul.f32 %v1797_v31, %v2301_v28  ;;  %v1799_v35 = vpop.eup %1798 }
 0x466   : > { %v1053_v26 = vmul.f32 %v1799_v35, %v2303_v29 }
 0x467   : > { %v1662_v38 = vpack.c.bf16 %v1047_v4, %v1046_v24 }
 0x468   : > { %v1801_v39 = vpop.eup %1800  ;;  %1631 = vmatmul.mubr.msk.f32.vlgmr.msra.gmra.mrb[10].mxu0 %vm249_vm0, %v1205_v37 }
 0x469   : > { %1663 = vmatpush3.bf16.msra.mxu1 %v1662_v38  ;;  %v1052_v48 = vmul.f32 %v1801_v39, %v2309_v32  ;;  %v1803_v28 = vpop.eup %1802 }
 0x46a   : > { %1670 = vmatprep.subr.bf16.mxu1 %v1942_v56  ;;  %v1055_v43 = vmul.f32 %v1803_v28, %v2311_v33 }
 0x46b   : > { %v1671_v42 = vpack.c.bf16 %v1053_v26, %v1052_v48 }
 0x46c   : > { %1620 = vmatmul.mubr.msk.f32.vlgmr.msra.gmra.mrb[12].mxu1 %vm249_vm0, %v1131_v41 }
 0x46d   : > { %1672 = vmatpush3.bf16.msra.mxu1 %v1671_v42  ;;  %1641 = vmatprep.mubr.msk.f32.mxu1 %vm1943_vm2, %v1944_v36 }
 0x46e   : > { %1673 = vmatprep.subr.bf16.mxu1 %v1942_v56 }
 0x492   : > { %v1020_v13 = vpop.xlane.xlu1 %1019 }
 0x493   : > { %1804 = vrcp.f32 %v1020_v13 }
 0x496   : > { %v1279_v14 = vpop.permute.xlu1 %1278 }
 0x49d   : > { %v1805_v32 = vpop.eup %1804 }
 0x49e   : > { %v1054_v29 = vmul.f32 %v1805_v32, %v2326_v40 }
 0x4a0   : > { %v1674_v17 = vpack.c.bf16 %v1055_v43, %v1054_v29 }
 0x4a2   : > { %1675 = vmatpush3.bf16.msra.mxu1 %v1674_v17 }
 0x4a5   : > { %1642 = vmatmul.mubr.msk.f32.vlgmr.msra.gmra.mrb[14].mxu1 %vm249_vm0, %v1279_v14 }
 0x52c   : > { %v1126_v36 = vpop.f32.mrb[8].mxu0 }
 0x52d   : > { %v1354_v0 = vmul.f32 %v1353_v49, %v1126_v36  ;;  %v1610_v56 = vpop.f32.mrb[9].mxu0 }
 0x52f   : > { %v1358_v50 = vadd.f32 %v1354_v0, %v2135_v5 }
 0x531   : > { %1362 = vst.msk [vmem:[%s231_s29] sm:$0xff] %vm249_vm0, %v1358_v50 }
 0x53b   : > { %v1274_v40 = vpop.f32.mrb[10].mxu0 }
 0x53c   : > { %v1356_v52 = vmul.f32 %v1353_v49, %v1274_v40  ;;  %v1632_v33 = vpop.f32.mrb[11].mxu0 }
 0x53e   : > { %v1360_v45 = vadd.f32 %v1356_v52, %v2141_v8 }
 0x53f   : > { %v1200_v54 = vpop.f32.mrb[12].mxu1 }
 0x540   : > { %1364 = vst.msk [vmem:[%s231_s29 + $0x10] sm:$0xff] %vm249_vm0, %v1360_v45  ;;  %v1355_v18 = vmul.f32 %v1353_v49, %v1200_v54  ;;  %v1621_v58 = vpop.f32.mrb[13].mxu1 }
 0x542   : > { %v1359_v59 = vadd.f32 %v1355_v18, %v2139_v7 }
 0x544   : > { %1363 = vst.msk [vmem:[%s231_s29 + $0x8] sm:$0xff] %vm249_vm0, %v1359_v59 }
 0x578   : > { %v1348_v5 = vpop.f32.mrb[14].mxu1 }
 0x579   : > { %v1357_v8 = vmul.f32 %v1353_v49, %v1348_v5  ;;  %v1643_v60 = vpop.f32.mrb[15].mxu1 }
 0x57b   : > { %v1361_v62 = vadd.f32 %v1357_v8, %v2147_v9 }
 0x57d   : > { %1365 = vst.msk [vmem:[%s231_s29 + $0x18] sm:$0xff] %vm249_vm0, %v1361_v62 }
 0x57e   : > { %1877 = shalt.err (!%p1874_p7)
}
 0x57f   : > { %s1878_s15 = scalar_lea.hbm %s2376_s27, 512  ;;  %s1882_s24 = scalar_lea.hbm %s2426_s4, 1024 }
 0x580   : > { %p1879_p9 = scmp.ne.s32.totalorder %s2376_s27, %s1878_s15  ;;  %p1883_p5 = scmp.lt.u32.totalorder %s2376_s27, %s2426_s4 }
 0x581   : > { %p1884_p11 = scmp.lt.u32.totalorder %s1882_s24, %s1878_s15  ;;  %p1886_p4 = scmp.lt.u32.totalorder %s1878_s15, %s2376_s27 }
 0x582   : > { %p1880_p1 = pnand %p1879_p9, %p2070_p12 }
 0x583   : > { %p1885_p2 = por %p1884_p11, %p1883_p5 }
 0x584   : > { %p1881_p0 = pneg %p1880_p1 }
 0x585   : > { %p1887_p6 = por %p1886_p4, %p1885_p2 }
 0x587   : > { %p1888_p8 = pnand %p1887_p6, %p1881_p0 }
 0x589   : > { %1891 = shalt.err (!%p1888_p8)
}
 0x58a   : > { %s1946_s9 = smov 128   ;;  %s1947_s29 = smov 8  }
 0x58b   : > { %1682 = dma.vmem_to_hbm [thread:$0]  (%p2070_p12), %s2371_s10, 512, %s2376_s27, %s1367_s7, %s1946_s9, %s1946_s9, %s1947_s29  }
 0x58c PF: > { %s1395_s16 = sand.u32 1, %s1922_s17   ;;  %p2441_p10 = scmp.ne.s32.totalorder %s2431_s23, 0 }
 0x58d   : > { %p2442_p13 = scmp.ge.s32.totalorder %s1934_s20, 2  ;;  %s1396_s5 = scalar_lea.sflag [#allocation5], %s1395_s16 }
 0x58f   : > { %p1693_p3 = pnand %p2442_p13, %p2441_p10 }
 0x591   : > { %1917 = dma.done.wait (!%p1693_p3), %s1396_s5, 512  }
 0x592   : > { %1919 = vsyncadd (!%p1693_p3), %s1396_s5, 4294966784  ;;  %p19_p7 = scmp.ge.s32.totalorder %s2032_s28, 4   ;;  %s2443_s17 = smov %s1926_s18 }
 0x593   : > { %s2444_s18 = smov %s1930_s19  ;;  %s2445_s19 = smov %s2066_s21 }
 0x594   : > { %s2446_s20 = smov %s2032_s28  ;;  %21 = sbr.rel (!%p19_p7) target bundleno = 8 (0x8), region = 85 }
 0x59b   :  { %1401 = vsyncpa [#allocation4], 1 }
 0x59c   :  { %1403 = vsyncpa [#allocation4 + $0x1], 1 }
 0x59d   :  { %1404 = vsyncpa [#allocation7], 1 }
 0x59e   :  { %1405 = vsyncpa [#allocation5], 1 }
 0x59f   :  { %1407 = vsyncpa [#allocation5 + $0x1], 1 }

</bundles_post_ra>
